<compile_context>
chip_gen: v7x
topology: tpu7x:2x2x1
jax: 0.10.0
libtpu: 0.0.40
codegen_flags: <defaults>
</compile_context>

<pallas_src>
import functools
import math

import jax
import jax.numpy as jnp
from jax.experimental import pallas as pl
from jax.experimental.pallas import tpu as pltpu

LANE = 128
SUBLANE = 8
TARGET_BLOCK_BYTES = 4 * 1024 * 1024   # per input per pipeline buffer
VMEM_LIMIT_BYTES = 32 * 1024 * 1024    # 2 inputs x 2 buffers x 4 MiB + headroom


def _accum_chunked(yt_ref, yp_ref, inter_ref, denom_ref, rows, min_sublanes):
    """Accumulate (8,128)-shaped partial sums of yt*yp and yt+yp over `rows` rows.

    The fold is split into up to 8 independent chunk partials (combined at the
    end) so the reduction is not one long serial vadd chain.
    """
    units = rows // min_sublanes
    g = 1
    for cand in (8, 4, 2):
        if units % cand == 0:
            g = cand
            break
    chunk = (units // g) * min_sublanes  # multiple of min_sublanes (tile-aligned)

    inter = None
    denom = None
    for j in range(g):
        lo = j * chunk
        hi = lo + chunk
        # Static ref slices are free views; cast per chunk (bf16 -> f32 on VPU).
        yt = yt_ref[lo:hi, :].astype(jnp.float32)
        yp = yp_ref[lo:hi, :].astype(jnp.float32)
        pi = (yt * yp).reshape(chunk // SUBLANE, SUBLANE, LANE).sum(axis=0)
        di = (yt + yp).reshape(chunk // SUBLANE, SUBLANE, LANE).sum(axis=0)
        inter = pi if inter is None else inter + pi
        denom = di if denom is None else denom + di

    inter_ref[...] += inter
    denom_ref[...] += denom


def _dice_kernel(yt_ref, yp_ref, inter_ref, denom_ref, *,
                 block_rows, valid_rows_last, n_blocks, min_sublanes):
    i = pl.program_id(0)  # reduction axis ("arbitrary")

    @pl.when(i == 0)
    def _init():
        inter_ref[...] = jnp.zeros_like(inter_ref)
        denom_ref[...] = jnp.zeros_like(denom_ref)

    if valid_rows_last == block_rows:
        # All blocks are full: single unmasked fast path.
        _accum_chunked(yt_ref, yp_ref, inter_ref, denom_ref,
                       block_rows, min_sublanes)
    else:
        is_last = i == (n_blocks - 1)

        @pl.when(i < n_blocks - 1)
        def _full():
            _accum_chunked(yt_ref, yp_ref, inter_ref, denom_ref,
                           block_rows, min_sublanes)

        @pl.when(is_last)
        def _partial():
            # Only the single partial trailing block pays this path; the
            # valid-row count is static and sublane-aligned, so we simply
            # slice the refs instead of building an iota mask.
            _accum_chunked(yt_ref, yp_ref, inter_ref, denom_ref,
                           valid_rows_last, min_sublanes)


def dice_loss(y_true, y_pred):
    """Pallas implementation of DiceLoss(exclude_background=False).forward."""
    assert y_true.shape == y_pred.shape, "y_true / y_pred shapes must match"
    n = math.prod(y_true.shape)
    smooth = jnp.float32(1.0)

    # Streaming dtype: keep f32 / bf16 native; upcast anything else to f32.
    dtype = jnp.promote_types(y_true.dtype, y_pred.dtype)
    if dtype not in (jnp.dtype(jnp.float32), jnp.dtype(jnp.bfloat16)):
        dtype = jnp.dtype(jnp.float32)
    itemsize = dtype.itemsize
    min_sublanes = 8 * (4 // itemsize)       # 8 for f32, 16 for bf16
    unit = min_sublanes * LANE               # lane-dense alignment unit

    yt = y_true.reshape(-1).astype(dtype)    # no-op cast for matching dtype
    yp = y_pred.reshape(-1).astype(dtype)

    # Split into an aligned bulk (kernel) and a tiny tail (< unit elems, JAX).
    bulk = (n // unit) * unit
    tail_inter = jnp.float32(0.0)
    tail_sum = jnp.float32(0.0)
    if bulk != n:
        yt_t = yt[bulk:].astype(jnp.float32)
        yp_t = yp[bulk:].astype(jnp.float32)
        tail_inter = jnp.sum(yt_t * yp_t)
        tail_sum = jnp.sum(yt_t) + jnp.sum(yp_t)

    if bulk == 0:
        inter = tail_inter
        denom = tail_sum
    else:
        host_rows = bulk // LANE
        yt2d = (yt if bulk == n else yt[:bulk]).reshape(host_rows, LANE)
        yp2d = (yp if bulk == n else yp[:bulk]).reshape(host_rows, LANE)

        block_rows_cap = max(min_sublanes, TARGET_BLOCK_BYTES // (LANE * itemsize))
        block_rows = min(block_rows_cap, host_rows)
        n_blocks = pl.cdiv(host_rows, block_rows)
        rem = host_rows % block_rows
        valid_rows_last = block_rows if rem == 0 else rem

        kernel = functools.partial(
            _dice_kernel,
            block_rows=block_rows,
            valid_rows_last=valid_rows_last,
            n_blocks=n_blocks,
            min_sublanes=min_sublanes,
        )

        inter_p, denom_p = pl.pallas_call(
            kernel,
            out_shape=(
                jax.ShapeDtypeStruct((SUBLANE, LANE), jnp.float32),
                jax.ShapeDtypeStruct((SUBLANE, LANE), jnp.float32),
            ),
            grid_spec=pltpu.PrefetchScalarGridSpec(
                num_scalar_prefetch=0,
                grid=(n_blocks,),
                in_specs=[
                    pl.BlockSpec((block_rows, LANE), lambda i: (i, 0)),
                    pl.BlockSpec((block_rows, LANE), lambda i: (i, 0)),
                ],
                out_specs=[
                    pl.BlockSpec((SUBLANE, LANE), lambda i: (0, 0)),
                    pl.BlockSpec((SUBLANE, LANE), lambda i: (0, 0)),
                ],
            ),
            compiler_params=pltpu.CompilerParams(
                dimension_semantics=("arbitrary",),
                vmem_limit_bytes=VMEM_LIMIT_BYTES,
            ),
            cost_estimate=pl.CostEstimate(
                flops=3 * n, transcendentals=0,
                bytes_accessed=2 * n * itemsize),
        )(yt2d, yp2d)

        inter = jnp.sum(inter_p) + tail_inter
        denom = jnp.sum(denom_p) + tail_sum

    coeff = (jnp.float32(2.0) * inter + smooth) / (denom + smooth)
    return jnp.float32(1.0) - coeff


def dice_loss_ref(y_true, y_pred):
    """Pure-JAX reference matching the PyTorch soft_dice."""
    smooth = 1.0
    yt = y_true.astype(jnp.float32)
    yp = y_pred.astype(jnp.float32)
    inter = jnp.sum(yt * yp)
    coeff = (2.0 * inter + smooth) / (jnp.sum(yt) + jnp.sum(yp) + smooth)
    return 1.0 - coeff


if __name__ == "__main__":
    key = jax.random.PRNGKey(0)
    k1, k2 = jax.random.split(key)
    # NCHW, matching the PyTorch module's expected (B, C, H, W) inputs.
    y_true = (jax.random.uniform(k1, (2, 4, 16, 16), jnp.float32) > 0.5).astype(jnp.float32)
    y_pred = jax.random.uniform(k2, (2, 4, 16, 16), jnp.float32)

    loss_fn = jax.jit(dice_loss)
    loss = loss_fn(y_true, y_pred)
    jax.block_until_ready(loss)

    ref = dice_loss_ref(y_true, y_pred)
    assert jnp.allclose(loss, ref, atol=1e-5, rtol=1e-5), (loss, ref)
    print("KERNEL_OK")
</pallas_src>

<mosaic_0001>
module attributes {stable_mosaic.version = 11 : i64} {
  func.func @_dice_kernel(%arg0: i32, %arg1: memref<16x128xf32, #tpu.memory_space<vmem>>, %arg2: memref<16x128xf32, #tpu.memory_space<vmem>>, %arg3: memref<8x128xf32, #tpu.memory_space<vmem>>, %arg4: memref<8x128xf32, #tpu.memory_space<vmem>>) attributes {dimension_semantics = [#tpu.dimension_semantics<arbitrary>], iteration_bounds = array<i64: 1>, scalar_prefetch = 0 : i64, scratch_operands = 0 : i64, tpu.core_type = #tpu.core_type<tc>, window_params = [{transform_indices = @transform_0, window_bounds = array<i64: 16, 128>}, {transform_indices = @transform_1, window_bounds = array<i64: 16, 128>}, {pipeline_mode = #tpu.pipeline_mode<synchronous>, transform_indices = @transform_2, window_bounds = array<i64: 8, 128>}, {pipeline_mode = #tpu.pipeline_mode<synchronous>, transform_indices = @transform_3, window_bounds = array<i64: 8, 128>}]} {
    %c0_i32 = arith.constant 0 : i32
    %0 = arith.cmpi eq, %arg0, %c0_i32 : i32
    %1 = arith.extui %0 : i1 to i32
    %c0_i32_0 = arith.constant 0 : i32
    %2 = arith.cmpi ne, %1, %c0_i32_0 : i32
    scf.if %2 {
      %cst_18 = arith.constant 0.000000e+00 : f32
      %27 = vector.broadcast %cst_18 : f32 to vector<8x128xf32>
      %c0_19 = arith.constant 0 : index
      %c0_20 = arith.constant 0 : index
      %28 = vector.load %arg3[%c0_19, %c0_20] : memref<8x128xf32, #tpu.memory_space<vmem>>, vector<8x128xf32>
      tpu.vector_store %arg3[%c0_19, %c0_20], %27 {strides = array<i32>} : memref<8x128xf32, #tpu.memory_space<vmem>>, vector<8x128xf32>,
      %cst_21 = arith.constant 0.000000e+00 : f32
      %29 = vector.broadcast %cst_21 : f32 to vector<8x128xf32>
      %c0_22 = arith.constant 0 : index
      %c0_23 = arith.constant 0 : index
      %30 = vector.load %arg4[%c0_22, %c0_23] : memref<8x128xf32, #tpu.memory_space<vmem>>, vector<8x128xf32>
      tpu.vector_store %arg4[%c0_22, %c0_23], %29 {strides = array<i32>} : memref<8x128xf32, #tpu.memory_space<vmem>>, vector<8x128xf32>,
    } else {
    }
    %c0 = arith.constant 0 : index
    %c0_1 = arith.constant 0 : index
    %3 = vector.load %arg1[%c0, %c0_1] : memref<16x128xf32, #tpu.memory_space<vmem>>, vector<8x128xf32>
    %c0_2 = arith.constant 0 : index
    %c0_3 = arith.constant 0 : index
    %4 = vector.load %arg2[%c0_2, %c0_3] : memref<16x128xf32, #tpu.memory_space<vmem>>, vector<8x128xf32>
    %5 = arith.mulf %3, %4 : vector<8x128xf32>
    %6 = vector.shape_cast %5 : vector<8x128xf32> to vector<1x8x128xf32>
    %cst = arith.constant dense<0.000000e+00> : vector<8x128xf32>
    %7 = vector.multi_reduction <add>, %6, %cst [0] : vector<1x8x128xf32> to vector<8x128xf32>
    %8 = arith.addf %3, %4 : vector<8x128xf32>
    %9 = vector.shape_cast %8 : vector<8x128xf32> to vector<1x8x128xf32>
    %cst_4 = arith.constant dense<0.000000e+00> : vector<8x128xf32>
    %10 = vector.multi_reduction <add>, %9, %cst_4 [0] : vector<1x8x128xf32> to vector<8x128xf32>
    %c8 = arith.constant 8 : index
    %c0_5 = arith.constant 0 : index
    %11 = vector.load %arg1[%c8, %c0_5] : memref<16x128xf32, #tpu.memory_space<vmem>>, vector<8x128xf32>
    %c8_6 = arith.constant 8 : index
    %c0_7 = arith.constant 0 : index
    %12 = vector.load %arg2[%c8_6, %c0_7] : memref<16x128xf32, #tpu.memory_space<vmem>>, vector<8x128xf32>
    %13 = arith.mulf %11, %12 : vector<8x128xf32>
    %14 = vector.shape_cast %13 : vector<8x128xf32> to vector<1x8x128xf32>
    %cst_8 = arith.constant dense<0.000000e+00> : vector<8x128xf32>
    %15 = vector.multi_reduction <add>, %14, %cst_8 [0] : vector<1x8x128xf32> to vector<8x128xf32>
    %16 = arith.addf %11, %12 : vector<8x128xf32>
    %17 = vector.shape_cast %16 : vector<8x128xf32> to vector<1x8x128xf32>
    %cst_9 = arith.constant dense<0.000000e+00> : vector<8x128xf32>
    %18 = vector.multi_reduction <add>, %17, %cst_9 [0] : vector<1x8x128xf32> to vector<8x128xf32>
    %19 = arith.addf %7, %15 : vector<8x128xf32>
    %20 = arith.addf %10, %18 : vector<8x128xf32>
    %c0_10 = arith.constant 0 : index
    %c0_11 = arith.constant 0 : index
    %21 = vector.load %arg3[%c0_10, %c0_11] : memref<8x128xf32, #tpu.memory_space<vmem>>, vector<8x128xf32>
    %22 = arith.addf %21, %19 : vector<8x128xf32>
    %c0_12 = arith.constant 0 : index
    %c0_13 = arith.constant 0 : index
    %23 = vector.load %arg3[%c0_12, %c0_13] : memref<8x128xf32, #tpu.memory_space<vmem>>, vector<8x128xf32>
    tpu.vector_store %arg3[%c0_12, %c0_13], %22 {strides = array<i32>} : memref<8x128xf32, #tpu.memory_space<vmem>>, vector<8x128xf32>,
    %c0_14 = arith.constant 0 : index
    %c0_15 = arith.constant 0 : index
    %24 = vector.load %arg4[%c0_14, %c0_15] : memref<8x128xf32, #tpu.memory_space<vmem>>, vector<8x128xf32>
    %25 = arith.addf %24, %20 : vector<8x128xf32>
    %c0_16 = arith.constant 0 : index
    %c0_17 = arith.constant 0 : index
    %26 = vector.load %arg4[%c0_16, %c0_17] : memref<8x128xf32, #tpu.memory_space<vmem>>, vector<8x128xf32>
    tpu.vector_store %arg4[%c0_16, %c0_17], %25 {strides = array<i32>} : memref<8x128xf32, #tpu.memory_space<vmem>>, vector<8x128xf32>,
    return
  }
  func.func @transform_0(%arg0: i32) -> (i32, i32) {
    %c0_i32 = arith.constant 0 : i32
    %c0_i32_0 = arith.constant 0 : i32
    return %arg0, %c0_i32 : i32, i32
  }
  func.func @transform_1(%arg0: i32) -> (i32, i32) {
    %c0_i32 = arith.constant 0 : i32
    %c0_i32_0 = arith.constant 0 : i32
    return %arg0, %c0_i32 : i32, i32
  }
  func.func @transform_2(%arg0: i32) -> (i32, i32) {
    %c0_i32 = arith.constant 0 : i32
    %c0_i32_0 = arith.constant 0 : i32
    %c0_i32_1 = arith.constant 0 : i32
    return %c0_i32, %c0_i32_0 : i32, i32
  }
  func.func @transform_3(%arg0: i32) -> (i32, i32) {
    %c0_i32 = arith.constant 0 : i32
    %c0_i32_0 = arith.constant 0 : i32
    %c0_i32_1 = arith.constant 0 : i32
    return %c0_i32, %c0_i32_0 : i32, i32
  }
}

</mosaic_0001>

<bundles_post_ra>
// kernel: dice_loss.1
= control target key start
LH: loop header
LB: loop body
LE: loop exit
PB: predicated region body
PF: predicated region fallthrough
CT: control target
= control target key end

     0   :  { %s86_s0 = inlined_call_operand.vmem [shape: f32[16,128], index: 0, kind: input, shape index: {}]   ;;  %s87_s1 = inlined_call_operand.vmem [shape: f32[16,128], index: 1, kind: input, shape index: {}]   ;;  %s88_s2 = inlined_call_operand.vmem [shape: f32[8,128], index: 2, kind: output, shape index: {0}]   ;;  %s89_s3 = inlined_call_operand.vmem [shape: f32[8,128], index: 3, kind: output, shape index: {1}]  }
   0x1   :  { %v19_v0 = vld [vmem:[%s86_s0] sm:$0xff]  ;;  %v25_v2 = vld [vmem:[%s86_s0 + $0x8] sm:$0xff] }
   0x2   :  { %v20_v1 = vld [vmem:[%s87_s1] sm:$0xff]  ;;  %v26_v4 = vld [vmem:[%s87_s1 + $0x8] sm:$0xff] }
   0x3   :  { %v21_v3 = vmul.f32 %v20_v1, %v19_v0  ;;  %v23_v5 = vadd.f32 %v20_v1, %v19_v0  ;;  %v27_v6 = vmul.f32 %v26_v4, %v25_v2  ;;  %v29_v7 = vadd.f32 %v26_v4, %v25_v2 }
   0x5   :  { %v31_v8 = vadd.f32 %v27_v6, %v21_v3  ;;  %v32_v9 = vadd.f32 %v29_v7, %v23_v5 }
   0x7   :  { %35 = vst [vmem:[%s88_s2] sm:$0xff] %v31_v8  ;;  %38 = vst [vmem:[%s89_s3] sm:$0xff] %v32_v9 }

</bundles_post_ra>
